<compile_context>
chip_gen: v5e
topology: v5e:2x2
jax: 0.10.0
libtpu: 0.0.40
codegen_flags: <defaults>
</compile_context>

<pallas_src>
import math

import jax
import jax.numpy as jnp
from jax.experimental import pallas as pl
from jax.experimental.pallas import tpu as pltpu


LANES = 128  # TPU lane width; slab rows and the output row are lane-dense.


def _round_up(x, m):
    return (x + m - 1) // m * m


def _offsets(h1, h2, h3):
    """Slab row layout. Single source of truth for packer AND kernel builder."""
    assert max(h1, h2, h3) <= LANES, "hidden sizes must fit in one lane tile"
    # Rows 0..2 (one shared 8-row region): folded-fc1 activation, b2, b3.
    off = {"h0": 0, "b2": 1, "b3": 2}
    off["w2"] = _round_up(3, 8)                   # h1 rows of w2t
    off["w3"] = _round_up(off["w2"] + h1, 8)      # h2 rows of w3t (lanes >= h3 zero)
    n_rows = _round_up(off["w3"] + h2, 8)
    return off, n_rows


def pack_params(params):
    """Pack one agent's params into a (n_rows, 128) f32 slab.  Call ONCE.

    params: w1t (1,h1), b1 (h1,), w2t (h1,h2), b2 (h2,), w3t (h2,h3), b3 (h3,)
            (weights already in (in, out) layout, i.e. transposed torch layout).
    fc1 + ReLU are folded here: row `h0` holds relu(w1_row + b1).
    """
    w1t, b1 = params["w1t"], params["b1"]
    w2t, b2 = params["w2t"], params["b2"]
    w3t, b3 = params["w3t"], params["b3"]
    h1, h2, h3 = w1t.shape[1], w2t.shape[1], w3t.shape[1]
    off, n_rows = _offsets(h1, h2, h3)

    h0 = jnp.maximum(w1t[0] + b1, 0.0)            # relu(fc1(ones(1))), pure in params

    slab = jnp.zeros((n_rows, LANES), jnp.float32)
    slab = slab.at[off["h0"], :h1].set(h0)
    slab = slab.at[off["b2"], :h2].set(b2)
    slab = slab.at[off["b3"], :h3].set(b3)
    slab = slab.at[off["w2"]:off["w2"] + h1, :h2].set(w2t)
    slab = slab.at[off["w3"]:off["w3"] + h2, :h3].set(w3t)
    return slab, (h1, h2, h3)


def _make_kernel(h1, h2, h3):
    """Kernel body with static slab offsets baked in (shared by both variants).

    p_ref: (n_rows, 128) packed params in VMEM.
    o_ref: (1, 128) lane-dense output row (lanes >= h3 are exactly 0).
    """
    off, _ = _offsets(h1, h2, h3)
    oh0, ob2, ob3, ow2, ow3 = off["h0"], off["b2"], off["b3"], off["w2"], off["w3"]

    def kernel(p_ref, o_ref):
        # fc1 + ReLU were folded at pack time; start directly at fc2.
        h = p_ref[oh0:oh0 + 1, :h1]                                   # (1, h1)

        # fc2 + ReLU: (1, h1) @ (h1, h2) on the MXU, f32 accumulate.
        w2 = p_ref[ow2:ow2 + h1, :h2]                                 # (h1, h2)
        b2 = p_ref[ob2:ob2 + 1, :h2]                                  # (1, h2)
        h = jnp.maximum(
            jnp.dot(h, w2, preferred_element_type=jnp.float32) + b2, 0.0)

        # fc3: use the full 128-lane padded weight/bias so the store is one
        # unmasked lane-dense vst; padded columns are zero => extra lanes are 0.
        w3 = p_ref[ow3:ow3 + h2, :]                                   # (h2, 128)
        b3 = p_ref[ob3:ob3 + 1, :]                                    # (1, 128)
        o_ref[...] = jnp.dot(h, w3, preferred_element_type=jnp.float32) + b3

    return kernel


def make_forward(h1, h2, h3):
    """Single-agent forward.  Takes a pre-packed slab, returns (h3,)."""
    kernel = _make_kernel(h1, h2, h3)

    @jax.jit
    def forward(slab):
        out = pl.pallas_call(
            kernel,
            out_shape=jax.ShapeDtypeStruct((1, LANES), jnp.float32),
            # Whole-array VMEM refs: no grid, no pipelining machinery for a
            # single-step ~36 KB kernel.
            in_specs=[pl.BlockSpec(memory_space=pltpu.MemorySpace.VMEM)],
            out_specs=pl.BlockSpec(memory_space=pltpu.MemorySpace.VMEM),
        )(slab)
        return out[0, :h3]

    return forward


def make_population_forward(h1, h2, h3):
    """Population forward: slabs (P, n_rows, 128) -> outputs (P, h3).

    One grid step per agent; population axis is "parallel" so v7x's two
    TensorCores split the work (no-op on v5e/v6e).
    """
    kernel = _make_kernel(h1, h2, h3)
    _, n_rows = _offsets(h1, h2, h3)

    @jax.jit
    def forward(slabs):
        P = slabs.shape[0]
        out = pl.pallas_call(
            kernel,
            out_shape=jax.ShapeDtypeStruct((P, 1, LANES), jnp.float32),
            grid=(P,),
            in_specs=[pl.BlockSpec((None, n_rows, LANES), lambda p: (p, 0, 0))],
            out_specs=pl.BlockSpec((None, 1, LANES), lambda p: (p, 0, 0)),
            compiler_params=pltpu.CompilerParams(
                dimension_semantics=("parallel",)),
        )(slabs)
        return out[:, 0, :h3]

    return forward


def init_params(key, layer_sizes):
    """Deterministic init mimicking torch.nn.Linear's U(-1/sqrt(fan_in), +...)."""
    params = {}
    dims = list(zip(layer_sizes[:-1], layer_sizes[1:]))  # (in, out) per layer
    keys = jax.random.split(key, 2 * len(dims))
    for i, (fan_in, fan_out) in enumerate(dims):
        bound = 1.0 / math.sqrt(fan_in)
        w = jax.random.uniform(keys[2 * i], (fan_in, fan_out),
                               minval=-bound, maxval=bound, dtype=jnp.float32)
        b = jax.random.uniform(keys[2 * i + 1], (fan_out,),
                               minval=-bound, maxval=bound, dtype=jnp.float32)
        params[f"w{i + 1}t"] = w   # already (in, out) = transposed torch layout
        params[f"b{i + 1}"] = b
    return params


def reference_forward(params):
    x = jnp.ones((1,), dtype=jnp.float32)
    h = jnp.maximum(x @ params["w1t"] + params["b1"], 0.0)
    h = jnp.maximum(h @ params["w2t"] + params["b2"], 0.0)
    return h @ params["w3t"] + params["b3"]


if __name__ == "__main__":
    # hp.layer_sizes = [1, 32, 32, 8] (small, consistent with the module)
    layer_sizes = [1, 32, 32, 8]
    h1, h2, h3 = layer_sizes[1], layer_sizes[2], layer_sizes[3]

    # ---- single-agent path: pack ONCE, then jitted kernel call per forward ----
    params = init_params(jax.random.PRNGKey(0), layer_sizes)
    slab, _ = pack_params(params)                      # pack-once (not per call)
    forward = make_forward(h1, h2, h3)

    out = jax.block_until_ready(forward(slab))
    ref = reference_forward(params)
    assert out.shape == (h3,)
    assert jnp.allclose(out, ref, atol=1e-5, rtol=1e-5)

    # ---- population path: P agents evaluated in one kernel launch ----
    P = 8
    pop_keys = jax.random.split(jax.random.PRNGKey(1), P)
    pop_params = [init_params(k, layer_sizes) for k in pop_keys]
    slabs = jnp.stack([pack_params(p)[0] for p in pop_params], axis=0)  # (P,72,128)
    pop_forward = make_population_forward(h1, h2, h3)

    pop_out = jax.block_until_ready(pop_forward(slabs))
    pop_ref = jnp.stack([reference_forward(p) for p in pop_params], axis=0)
    assert pop_out.shape == (P, h3)
    assert jnp.allclose(pop_out, pop_ref, atol=1e-5, rtol=1e-5)

    print("KERNEL_OK")
</pallas_src>

<mosaic_0001>
module attributes {stable_mosaic.version = 11 : i64} {
  func.func @kernel(%arg0: memref<72x128xf32, #tpu.memory_space<vmem>>, %arg1: memref<1x128xf32, #tpu.memory_space<vmem>>) attributes {dimension_semantics = [], scalar_prefetch = 0 : i64, scratch_operands = 0 : i64, tpu.core_type = #tpu.core_type<tc>} {
    %c0 = arith.constant 0 : index
    %c0_0 = arith.constant 0 : index
    %0 = vector.load %arg0[%c0, %c0_0] : memref<72x128xf32, #tpu.memory_space<vmem>>, vector<1x32xf32>
    %c8 = arith.constant 8 : index
    %c0_1 = arith.constant 0 : index
    %1 = vector.load %arg0[%c8, %c0_1] : memref<72x128xf32, #tpu.memory_space<vmem>>, vector<32x32xf32>
    %c1 = arith.constant 1 : index
    %c0_2 = arith.constant 0 : index
    %2 = vector.load %arg0[%c1, %c0_2] : memref<72x128xf32, #tpu.memory_space<vmem>>, vector<1x32xf32>
    %cst = arith.constant dense<0.000000e+00> : vector<1x32xf32>
    %3 = tpu.matmul %0, %1, %cst {dimension_numbers = #tpu.dot_dimension_numbers<[1], [0], [0], [1], [0, 0, 1, 1], [], []>} : vector<1x32xf32>, vector<32x32xf32>, vector<1x32xf32> -> vector<1x32xf32>
    %4 = arith.addf %3, %2 : vector<1x32xf32>
    %cst_3 = arith.constant 0.000000e+00 : f32
    %5 = vector.broadcast %cst_3 : f32 to vector<1x32xf32>
    %6 = arith.maximumf %4, %5 : vector<1x32xf32>
    %c40 = arith.constant 40 : index
    %c0_4 = arith.constant 0 : index
    %7 = vector.load %arg0[%c40, %c0_4] : memref<72x128xf32, #tpu.memory_space<vmem>>, vector<32x128xf32>
    %c2 = arith.constant 2 : index
    %c0_5 = arith.constant 0 : index
    %8 = vector.load %arg0[%c2, %c0_5] : memref<72x128xf32, #tpu.memory_space<vmem>>, vector<1x128xf32>
    %cst_6 = arith.constant dense<0.000000e+00> : vector<1x128xf32>
    %9 = tpu.matmul %6, %7, %cst_6 {dimension_numbers = #tpu.dot_dimension_numbers<[1], [0], [0], [1], [0, 0, 1, 1], [], []>} : vector<1x32xf32>, vector<32x128xf32>, vector<1x128xf32> -> vector<1x128xf32>
    %10 = arith.addf %9, %8 : vector<1x128xf32>
    %c0_7 = arith.constant 0 : index
    %c0_8 = arith.constant 0 : index
    %11 = vector.load %arg1[%c0_7, %c0_8] : memref<1x128xf32, #tpu.memory_space<vmem>>, vector<1x128xf32>
    tpu.vector_store %arg1[%c0_7, %c0_8], %10 {strides = array<i32>} : memref<1x128xf32, #tpu.memory_space<vmem>>, vector<1x128xf32>,
    return
  }
}

</mosaic_0001>

<bundles_post_ra>
// kernel: forward.1
= control target key start
LH: loop header
LB: loop body
LE: loop exit
PB: predicated region body
PF: predicated region fallthrough
CT: control target
= control target key end

     0   :  { %6 = vsyncpa [#allocation3], 0  ;;  %s120_s9 = smov [#allocation2]   ;;  %s121_s11 = smov 128   ;;  %s139_s0 = inlined_call_operand.hbm [shape: f32[72,128], index: 0, kind: input, shape index: {}]   ;;  %s140_s1 = inlined_call_operand.vmem [shape: f32[1,128], index: 1, kind: output, shape index: {}]  }
   0x1   :  { %s11_s8 = sshll.u32 %s139_s0, 4  ;;  %s13_s10 = sshll.u32 %s120_s9, 4  ;;  %s12_s8 = int_to_ptr.hbm [resolvable:$true] %s11_s8  ;;  %s14_s10 = int_to_ptr.vmem [resolvable:$true] %s13_s10 }
   0x2   :  { %s122_s12 = smov 8  }
   0x3   :  { %19 = dma.hbm_to_vmem [thread:$0]  %s12_s8, 1152, %s14_s10, [#allocation3], %s121_s11, %s121_s11, %s122_s12  }
   0x4   :  { %118 = dma.done.wait [#allocation3], 1152  }
   0x5   :  { %119 = vsyncadd [#allocation3], 4294966144  ;;  %v28_v0 = vld [vmem:[#allocation2 + $0x20] sm:$0xff]  ;;  %v27_v1 = vld [vmem:[#allocation2 + $0x18] sm:$0xff]  ;;  %vm30_vm0 = vcmask 261120  }
   0x6   :  { %46 = vmatpush.msra.mxu0 %v28_v0  ;;  %v58_v2 = vld [vmem:[#allocation2 + $0x40] sm:$0xff]  ;;  %v26_v3 = vld [vmem:[#allocation2 + $0x10] sm:$0xff]  ;;  %v25_v4 = vld [vmem:[#allocation2 + $0x8] sm:$0xff] }
   0x7   :  { %75 = vmatpush.msra.mxu1 %v58_v2  ;;  %v24_v5 = vld [vmem:[#allocation2] sm:$0x1]  ;;  %v57_v6 = vld [vmem:[#allocation2 + $0x38] sm:$0xff]  ;;  %v56_v7 = vld [vmem:[#allocation2 + $0x30] sm:$0xff] }
   0x8   :  { %47 = vmatpush.msra.mxu0 %v27_v1  ;;  %v55_v8 = vld [vmem:[#allocation2 + $0x28] sm:$0xff]  ;;  %v29_v9 = vld [vmem:[#allocation2 + $0x1] sm:$0x1]  ;;  %v59_v13 = vld [vmem:[#allocation2 + $0x2] sm:$0x1] }
   0x9   :  { %76 = vmatpush.msra.mxu1 %v57_v6 }
   0xa   :  { %48 = vmatpush.msra.mxu0 %v26_v3 }
   0xb   :  { %77 = vmatpush.msra.mxu1 %v56_v7 }
   0xc   :  { %49 = vmatpush.msra.mxu0 %v25_v4 }
   0xd   :  { %89 = vmatmul.msk.f32.vlgmr.msra.gmra.mxu0 %vm30_vm0, %v24_v5  ;;  %78 = vmatpush.msra.mxu1 %v55_v8 }
  0x8a   :  { %v51_v10 = vpop.f32.mrf.mxu0 }
  0x8b   :  { %v52_v11 = vadd.f32 %v51_v10, %v29_v9 }
  0x8d   :  { %v54_v12 = vmax.f32 %v52_v11, 0.0 }
  0x8f   :  { %90 = vmatmul.msk.f32.vlgmr.msra.gmra.mxu1 %vm30_vm0, %v54_v12 }
 0x10c   :  { %v80_v14 = vpop.f32.mrf.mxu1 }
 0x10d   :  { %v81_v15 = vadd.f32 %v80_v14, %v59_v13 }
 0x10f   :  { %83 = vst [vmem:[%s140_s1] sm:$0x1] %v81_v15 }
 0x110   :  { %88 = vsyncpa [#allocation3], 1 }

</bundles_post_ra>
